<compile_context>
chip_gen: v7x
topology: tpu7x:2x2x1
jax: 0.10.0
libtpu: 0.0.40
codegen_flags: <defaults>
</compile_context>

<pallas_src>
import numpy as np
import jax
import jax.numpy as jnp
from jax import lax
from jax.experimental import pallas as pl
from jax.experimental.pallas import tpu as pltpu

# ---------------- static configuration (small but consistent with the module) ---------
W_LEN, STEP, CONTEXT = 16, 2, 4
STRIDE1 = 1
C1, K1, P1 = 8, 5, 2            # out_channels1, kernel_len1, pool_size1
C2, K2, P2 = 6, 3, 2            # out_channels2, kernel_len2, pool_size2
H, DH = 16, 16                  # lstm_hidden_units, dense_hidden_units
N = 2                           # batch

LEN_CTX = CONTEXT * STEP                      # 8
L = 2 * LEN_CTX + W_LEN                       # 32  (len_data)
L1 = (L - K1) // STRIDE1 + 1                  # 28  (conv1 output length)
L1P = L1 // P1                                # 14  (after max_pool1d)
CIN2 = (L - K1 + 1) // (STRIDE1 * P1)         # 14  (in_channels2, as in __init__)
L2 = C1 - K2 + 1                              # 6   (conv2 output length)
L2P = L2 // P2                                # 3
LEN_LSTM1 = C2 * L2P                          # 18
assert CIN2 == L1P, "module shape constraint (needs stride1 * pool_size1 layout match)"

# ---- packed-weight layout (all offsets 8-sublane / 128-lane aligned) ------------------
N1 = C1 * L1P                                 # 112  conv1 pooled feature width
N2 = C2 * L2P                                 # 18   conv2 pooled feature width
PH1 = 128                                     # lane stride between pool-phase groups
PH2 = 128
NC1 = PH1 + N1                                # 240  conv1 matmul output width
NC2 = PH2 + N2                                # 146  conv2 matmul output width
NCOLS = 2 * PH1                               # 256  lane width of the conv weight pack

ROW_W1 = 0                                    # conv1 structured weight, L rows
ROW_B1 = 32                                   # conv1 bias row
ROW_W2 = 40                                   # conv2 structured weight, N1 rows
ROW_B2 = 152                                  # conv2 bias row
WCONV_ROWS = 160

WREST_COLS = 3 * H                            # 48  (gates packed [i | o | g])
R_WIH1 = 0                                    # (18, 48)
R_BL1 = 24
R_WIH2 = 32                                   # (16, 48)
R_BL2 = 48
R_FC1W = 56                                   # (16, 16)
R_FC1B = 72
R_FC2W = 80                                   # (16, 2)
R_FC2B = 96
WREST_ROWS = 104


# ----------------------------------- Pallas kernel ------------------------------------
def cldnn_kernel(x_ref, wc_ref, wr_ref, out_ref):
    f32 = jnp.float32
    x = x_ref[...].astype(f32)                                     # (nb, L)

    # ---- conv1 (+bias) as one structured matmul; even/odd pool phases land in ----
    # ---- separate 128-lane groups, so pool1 is an aligned elementwise max.    ----
    y1 = (jnp.dot(x, wc_ref[ROW_W1:ROW_W1 + L, 0:NC1], preferred_element_type=f32)
          + wc_ref[ROW_B1:ROW_B1 + 1, 0:NC1])                      # (nb, 240)
    act = jnp.maximum(y1[:, 0:N1], y1[:, PH1:PH1 + N1])            # max_pool1d(2)
    act = jnp.log(jnp.maximum(act, 0.0) + 0.01)                    # (nb, 112)

    # ---- transpose(1,2) + conv2 (+bias): folded into one structured matmul over ----
    # ---- the 112 pooled features; pool-phase groups again 128-lane aligned.     ----
    z = (jnp.dot(act, wc_ref[ROW_W2:ROW_W2 + N1, 0:NC2], preferred_element_type=f32)
         + wc_ref[ROW_B2:ROW_B2 + 1, 0:NC2])                       # (nb, 146)
    feat = jnp.maximum(jnp.maximum(z[:, 0:N2], z[:, PH2:PH2 + N2]), 0.0)  # (nb, 18)
    # columns are already in torch flatten order (c2 * L2P + m) -> no permutation.

    # ---- lstm1 / lstm2 : seq_len == 1, zero (h, c) so W_hh term and the forget ----
    # ---- gate are dead; gates packed [i | o | g] (one sigmoid slab + two tanh). ----
    def lstm_cell(xin, w_row, n_in, b_row):
        g = (jnp.dot(xin, wr_ref[w_row:w_row + n_in, 0:3 * H], preferred_element_type=f32)
             + wr_ref[b_row:b_row + 1, 0:3 * H])
        sig = jax.nn.sigmoid(g[:, 0:2 * H])                        # [i | o]
        c = sig[:, 0:H] * jnp.tanh(g[:, 2 * H:3 * H])              # i * g   (c_prev == 0)
        return sig[:, H:2 * H] * jnp.tanh(c)                       # o * tanh(c)

    h1 = lstm_cell(feat, R_WIH1, LEN_LSTM1, R_BL1)                 # (nb, H)
    h2 = lstm_cell(h1, R_WIH2, H, R_BL2)                           # (nb, H)

    # ---- fc1 + relu + fc2 + log_softmax(dim=1) ----
    d = jnp.maximum(jnp.dot(h2, wr_ref[R_FC1W:R_FC1W + H, 0:DH],
                            preferred_element_type=f32)
                    + wr_ref[R_FC1B:R_FC1B + 1, 0:DH], 0.0)
    logits = (jnp.dot(d, wr_ref[R_FC2W:R_FC2W + DH, 0:2], preferred_element_type=f32)
              + wr_ref[R_FC2B:R_FC2B + 1, 0:2])
    mx = jnp.max(logits, axis=1, keepdims=True)
    lse = jnp.log(jnp.sum(jnp.exp(logits - mx), axis=1, keepdims=True))
    out_ref[...] = (logits - mx - lse).astype(out_ref.dtype)


# --------------------------- wrapper-side weight packing (layout plumbing) -------------
def _pack_params(p):
    w1 = np.asarray(p['w1'], np.float32)[:, 0, :]                  # (C1, K1)
    b1 = np.asarray(p['b1'], np.float32)
    w2 = np.asarray(p['w2'], np.float32)                           # (C2, CIN2, K2)
    b2 = np.asarray(p['b2'], np.float32)

    wconv = np.zeros((WCONV_ROWS, NCOLS), np.float32)
    # conv1: y[n, c, t] = b1[c] + sum_k w1[c,k] * x[n, t+k]; column = phase*PH1 + c*L1P + lp
    for ph in range(P1):
        for c in range(C1):
            for lp in range(L1P):
                col = ph * PH1 + c * L1P + lp
                t = lp * P1 + ph
                wconv[ROW_W1 + t:ROW_W1 + t + K1, col] = w1[c]
                wconv[ROW_B1, col] = b1[c]
    # conv2 (after transpose(1,2)): z[n, c2, t] = b2[c2] + sum_{l,k} w2[c2,l,k]*act[n,(t+k)*L1P+l]
    # column = phase*PH2 + c2*L2P + m  (torch flatten order per phase)
    for ph in range(P2):
        for c2 in range(C2):
            for m in range(L2P):
                col = ph * PH2 + c2 * L2P + m
                t = m * P2 + ph
                wconv[ROW_B2, col] = b2[c2]
                for k in range(K2):
                    cprime = t + k
                    for l in range(L1P):
                        wconv[ROW_W2 + cprime * L1P + l, col] = w2[c2, l, k]

    # LSTM weights: drop forget gate, reorder to [i | o | g], fold the two biases.
    def lstm_pack(w_ih, b_ih, b_hh):
        w = np.asarray(w_ih, np.float32)
        b = np.asarray(b_ih, np.float32) + np.asarray(b_hh, np.float32)
        wi, wf, wg, wo = np.split(w, 4, axis=0)
        bi, bf, bg, bo = np.split(b, 4)
        return np.concatenate([wi, wo, wg], axis=0).T, np.concatenate([bi, bo, bg])

    wih1, bl1 = lstm_pack(p['w_ih1'], p['b_ih1'], p['b_hh1'])      # (18,48), (48,)
    wih2, bl2 = lstm_pack(p['w_ih2'], p['b_ih2'], p['b_hh2'])      # (16,48), (48,)
    fc1w = np.asarray(p['fc1_w'], np.float32).T                    # (H, DH)
    fc1b = np.asarray(p['fc1_b'], np.float32)
    fc2w = np.asarray(p['fc2_w'], np.float32).T                    # (DH, 2)
    fc2b = np.asarray(p['fc2_b'], np.float32)

    wrest = np.zeros((WREST_ROWS, WREST_COLS), np.float32)
    wrest[R_WIH1:R_WIH1 + LEN_LSTM1, :3 * H] = wih1
    wrest[R_BL1, :3 * H] = bl1
    wrest[R_WIH2:R_WIH2 + H, :3 * H] = wih2
    wrest[R_BL2, :3 * H] = bl2
    wrest[R_FC1W:R_FC1W + H, :DH] = fc1w
    wrest[R_FC1B, :DH] = fc1b
    wrest[R_FC2W:R_FC2W + DH, :2] = fc2w
    wrest[R_FC2B, :2] = fc2b
    return jnp.asarray(wconv), jnp.asarray(wrest)


# ----------------------------------- wrapper (glue) ------------------------------------
def cldnn_forward(x, p, *, batch_block=256):
    n = x.shape[0]
    nb = min(batch_block, n)
    assert n % nb == 0, "batch must be divisible by the batch block"
    x2d = x[:, 0, :].astype(jnp.float32)                           # squeeze channel dim
    wconv, wrest = _pack_params(p)

    return pl.pallas_call(
        cldnn_kernel,
        out_shape=jax.ShapeDtypeStruct((n, 2), jnp.float32),
        grid=(n // nb,),
        in_specs=[
            pl.BlockSpec((nb, L), lambda i: (i, 0)),
            pl.BlockSpec((WCONV_ROWS, NCOLS), lambda i: (0, 0)),
            pl.BlockSpec((WREST_ROWS, WREST_COLS), lambda i: (0, 0)),
        ],
        out_specs=pl.BlockSpec((nb, 2), lambda i: (i, 0)),
        compiler_params=pltpu.CompilerParams(dimension_semantics=("parallel",)),
    )(x2d, wconv, wrest)


# ------------------------ pure-JAX reference (mirrors torch ops) ------------------------
def reference_forward(x, p):
    dn = ('NCH', 'OIH', 'NCH')
    y = lax.conv_general_dilated(x, p['w1'], (STRIDE1,), 'VALID', dimension_numbers=dn)
    y = y + p['b1'][None, :, None]
    y = lax.reduce_window(y, -jnp.inf, lax.max, (1, 1, P1), (1, 1, P1), 'VALID')
    y = jnp.log(jnp.maximum(y, 0.0) + 0.01)
    y = jnp.transpose(y, (0, 2, 1))
    y = lax.conv_general_dilated(y, p['w2'], (1,), 'VALID', dimension_numbers=dn)
    y = y + p['b2'][None, :, None]
    y = lax.reduce_window(y, -jnp.inf, lax.max, (1, 1, P2), (1, 1, P2), 'VALID')
    y = jnp.maximum(y, 0.0)
    feat = y.reshape(y.shape[0], -1)

    def lstm(xin, w_ih, b_ih, b_hh):
        gates = xin @ w_ih.T + b_ih + b_hh
        i, f, g, o = jnp.split(gates, 4, axis=-1)
        c = jax.nn.sigmoid(i) * jnp.tanh(g)
        return jax.nn.sigmoid(o) * jnp.tanh(c)

    h1 = lstm(feat, p['w_ih1'], p['b_ih1'], p['b_hh1'])
    h2 = lstm(h1, p['w_ih2'], p['b_ih2'], p['b_hh2'])
    d = jnp.maximum(h2 @ p['fc1_w'].T + p['fc1_b'], 0.0)
    logits = d @ p['fc2_w'].T + p['fc2_b']
    return jax.nn.log_softmax(logits, axis=1)


# --------------------------------------- main ------------------------------------------
if __name__ == "__main__":
    key = jax.random.PRNGKey(0)
    ks = jax.random.split(key, 17)
    nrm = lambda k, shape, s: (jax.random.normal(k, shape, jnp.float32) * s)
    p = {
        'w1':    nrm(ks[0],  (C1, 1, K1), 0.2),
        'b1':    nrm(ks[1],  (C1,), 0.1),
        'w2':    nrm(ks[2],  (C2, CIN2, K2), 0.2),
        'b2':    nrm(ks[3],  (C2,), 0.1),
        'w_ih1': nrm(ks[4],  (4 * H, LEN_LSTM1), 0.2),
        'w_hh1': nrm(ks[5],  (4 * H, H), 0.2),        # unused at seq_len=1, zero init
        'b_ih1': nrm(ks[6],  (4 * H,), 0.1),
        'b_hh1': nrm(ks[7],  (4 * H,), 0.1),
        'w_ih2': nrm(ks[8],  (4 * H, H), 0.2),
        'w_hh2': nrm(ks[9],  (4 * H, H), 0.2),        # unused at seq_len=1, zero init
        'b_ih2': nrm(ks[10], (4 * H,), 0.1),
        'b_hh2': nrm(ks[11], (4 * H,), 0.1),
        'fc1_w': nrm(ks[12], (DH, H), 0.2),
        'fc1_b': nrm(ks[13], (DH,), 0.1),
        'fc2_w': nrm(ks[14], (2, DH), 0.2),
        'fc2_b': nrm(ks[15], (2,), 0.1),
    }
    x = jax.random.normal(ks[16], (N, 1, L), jnp.float32)

    out = cldnn_forward(x, p)
    out = jax.block_until_ready(out)

    ref = reference_forward(x, p)
    assert out.shape == (N, 2)
    assert np.allclose(np.asarray(out), np.asarray(ref), atol=5e-3, rtol=5e-3), (out, ref)
    print("KERNEL_OK")
</pallas_src>

<mosaic_0001>
module attributes {stable_mosaic.version = 11 : i64} {
  func.func @cldnn_kernel(%arg0: i32, %arg1: memref<2x32xf32, #tpu.memory_space<vmem>>, %arg2: memref<160x256xf32, #tpu.memory_space<vmem>>, %arg3: memref<104x48xf32, #tpu.memory_space<vmem>>, %arg4: memref<2x2xf32, #tpu.memory_space<vmem>>) attributes {dimension_semantics = [#tpu.dimension_semantics<parallel>], iteration_bounds = array<i64: 1>, scalar_prefetch = 0 : i64, scratch_operands = 0 : i64, tpu.core_type = #tpu.core_type<tc>, window_params = [{transform_indices = @transform_0, window_bounds = array<i64: 2, 32>}, {pipeline_mode = #tpu.pipeline_mode<synchronous>, transform_indices = @transform_1, window_bounds = array<i64: 160, 256>}, {pipeline_mode = #tpu.pipeline_mode<synchronous>, transform_indices = @transform_2, window_bounds = array<i64: 104, 48>}, {transform_indices = @transform_3, window_bounds = array<i64: 2, 2>}]} {
    %c0 = arith.constant 0 : index
    %c0_0 = arith.constant 0 : index
    %0 = vector.load %arg1[%c0, %c0_0] : memref<2x32xf32, #tpu.memory_space<vmem>>, vector<2x32xf32>
    %c0_1 = arith.constant 0 : index
    %c0_2 = arith.constant 0 : index
    %1 = vector.load %arg2[%c0_1, %c0_2] : memref<160x256xf32, #tpu.memory_space<vmem>>, vector<32x240xf32>
    %cst = arith.constant dense<0.000000e+00> : vector<2x240xf32>
    %2 = tpu.matmul %0, %1, %cst {dimension_numbers = #tpu.dot_dimension_numbers<[1], [0], [0], [1], [0, 0, 1, 1], [], []>} : vector<2x32xf32>, vector<32x240xf32>, vector<2x240xf32> -> vector<2x240xf32>
    %c32 = arith.constant 32 : index
    %c0_3 = arith.constant 0 : index
    %3 = vector.load %arg2[%c32, %c0_3] : memref<160x256xf32, #tpu.memory_space<vmem>>, vector<1x240xf32>
    %4 = vector.broadcast %3 : vector<1x240xf32> to vector<2x240xf32>
    %5 = arith.addf %2, %4 : vector<2x240xf32>
    %6 = vector.extract_strided_slice %5 {offsets = [0, 0], sizes = [2, 112], strides = [1, 1]} : vector<2x240xf32> to vector<2x112xf32>
    %7 = vector.extract_strided_slice %5 {offsets = [0, 128], sizes = [2, 112], strides = [1, 1]} : vector<2x240xf32> to vector<2x112xf32>
    %8 = arith.maximumf %6, %7 : vector<2x112xf32>
    %cst_4 = arith.constant 0.000000e+00 : f32
    %9 = vector.broadcast %cst_4 : f32 to vector<2x112xf32>
    %10 = arith.maximumf %8, %9 : vector<2x112xf32>
    %cst_5 = arith.constant 0.00999999977 : f32
    %11 = vector.broadcast %cst_5 : f32 to vector<2x112xf32>
    %12 = arith.addf %10, %11 : vector<2x112xf32>
    %13 = math.log %12 : vector<2x112xf32>
    %c40 = arith.constant 40 : index
    %c0_6 = arith.constant 0 : index
    %14 = vector.load %arg2[%c40, %c0_6] : memref<160x256xf32, #tpu.memory_space<vmem>>, vector<112x146xf32>
    %cst_7 = arith.constant dense<0.000000e+00> : vector<2x146xf32>
    %15 = tpu.matmul %13, %14, %cst_7 {dimension_numbers = #tpu.dot_dimension_numbers<[1], [0], [0], [1], [0, 0, 1, 1], [], []>} : vector<2x112xf32>, vector<112x146xf32>, vector<2x146xf32> -> vector<2x146xf32>
    %c152 = arith.constant 152 : index
    %c0_8 = arith.constant 0 : index
    %16 = vector.load %arg2[%c152, %c0_8] : memref<160x256xf32, #tpu.memory_space<vmem>>, vector<1x146xf32>
    %17 = vector.broadcast %16 : vector<1x146xf32> to vector<2x146xf32>
    %18 = arith.addf %15, %17 : vector<2x146xf32>
    %19 = vector.extract_strided_slice %18 {offsets = [0, 0], sizes = [2, 18], strides = [1, 1]} : vector<2x146xf32> to vector<2x18xf32>
    %20 = vector.extract_strided_slice %18 {offsets = [0, 128], sizes = [2, 18], strides = [1, 1]} : vector<2x146xf32> to vector<2x18xf32>
    %21 = arith.maximumf %19, %20 : vector<2x18xf32>
    %cst_9 = arith.constant 0.000000e+00 : f32
    %22 = vector.broadcast %cst_9 : f32 to vector<2x18xf32>
    %23 = arith.maximumf %21, %22 : vector<2x18xf32>
    %c0_10 = arith.constant 0 : index
    %c0_11 = arith.constant 0 : index
    %24 = vector.load %arg3[%c0_10, %c0_11] : memref<104x48xf32, #tpu.memory_space<vmem>>, vector<18x48xf32>
    %cst_12 = arith.constant dense<0.000000e+00> : vector<2x48xf32>
    %25 = tpu.matmul %23, %24, %cst_12 {dimension_numbers = #tpu.dot_dimension_numbers<[1], [0], [0], [1], [0, 0, 1, 1], [], []>} : vector<2x18xf32>, vector<18x48xf32>, vector<2x48xf32> -> vector<2x48xf32>
    %c24 = arith.constant 24 : index
    %c0_13 = arith.constant 0 : index
    %26 = vector.load %arg3[%c24, %c0_13] : memref<104x48xf32, #tpu.memory_space<vmem>>, vector<1x48xf32>
    %27 = vector.broadcast %26 : vector<1x48xf32> to vector<2x48xf32>
    %28 = arith.addf %25, %27 : vector<2x48xf32>
    %29 = vector.extract_strided_slice %28 {offsets = [0, 0], sizes = [2, 32], strides = [1, 1]} : vector<2x48xf32> to vector<2x32xf32>
    %30 = arith.negf %29 : vector<2x32xf32>
    %31 = math.exp %30 : vector<2x32xf32>
    %cst_14 = arith.constant 1.000000e+00 : f32
    %32 = vector.broadcast %cst_14 : f32 to vector<2x32xf32>
    %33 = arith.addf %32, %31 : vector<2x32xf32>
    %34 = arith.divf %32, %33 : vector<2x32xf32>
    %35 = vector.extract_strided_slice %34 {offsets = [0, 0], sizes = [2, 16], strides = [1, 1]} : vector<2x32xf32> to vector<2x16xf32>
    %36 = vector.extract_strided_slice %28 {offsets = [0, 32], sizes = [2, 16], strides = [1, 1]} : vector<2x48xf32> to vector<2x16xf32>
    %37 = math.tanh %36 : vector<2x16xf32>
    %38 = arith.mulf %35, %37 : vector<2x16xf32>
    %39 = vector.extract_strided_slice %34 {offsets = [0, 16], sizes = [2, 16], strides = [1, 1]} : vector<2x32xf32> to vector<2x16xf32>
    %40 = math.tanh %38 : vector<2x16xf32>
    %41 = arith.mulf %39, %40 : vector<2x16xf32>
    %c32_15 = arith.constant 32 : index
    %c0_16 = arith.constant 0 : index
    %42 = vector.load %arg3[%c32_15, %c0_16] : memref<104x48xf32, #tpu.memory_space<vmem>>, vector<16x48xf32>
    %cst_17 = arith.constant dense<0.000000e+00> : vector<2x48xf32>
    %43 = tpu.matmul %41, %42, %cst_17 {dimension_numbers = #tpu.dot_dimension_numbers<[1], [0], [0], [1], [0, 0, 1, 1], [], []>} : vector<2x16xf32>, vector<16x48xf32>, vector<2x48xf32> -> vector<2x48xf32>
    %c48 = arith.constant 48 : index
    %c0_18 = arith.constant 0 : index
    %44 = vector.load %arg3[%c48, %c0_18] : memref<104x48xf32, #tpu.memory_space<vmem>>, vector<1x48xf32>
    %45 = vector.broadcast %44 : vector<1x48xf32> to vector<2x48xf32>
    %46 = arith.addf %43, %45 : vector<2x48xf32>
    %47 = vector.extract_strided_slice %46 {offsets = [0, 0], sizes = [2, 32], strides = [1, 1]} : vector<2x48xf32> to vector<2x32xf32>
    %48 = arith.negf %47 : vector<2x32xf32>
    %49 = math.exp %48 : vector<2x32xf32>
    %cst_19 = arith.constant 1.000000e+00 : f32
    %50 = vector.broadcast %cst_19 : f32 to vector<2x32xf32>
    %51 = arith.addf %50, %49 : vector<2x32xf32>
    %52 = arith.divf %50, %51 : vector<2x32xf32>
    %53 = vector.extract_strided_slice %52 {offsets = [0, 0], sizes = [2, 16], strides = [1, 1]} : vector<2x32xf32> to vector<2x16xf32>
    %54 = vector.extract_strided_slice %46 {offsets = [0, 32], sizes = [2, 16], strides = [1, 1]} : vector<2x48xf32> to vector<2x16xf32>
    %55 = math.tanh %54 : vector<2x16xf32>
    %56 = arith.mulf %53, %55 : vector<2x16xf32>
    %57 = vector.extract_strided_slice %52 {offsets = [0, 16], sizes = [2, 16], strides = [1, 1]} : vector<2x32xf32> to vector<2x16xf32>
    %58 = math.tanh %56 : vector<2x16xf32>
    %59 = arith.mulf %57, %58 : vector<2x16xf32>
    %c56 = arith.constant 56 : index
    %c0_20 = arith.constant 0 : index
    %60 = vector.load %arg3[%c56, %c0_20] : memref<104x48xf32, #tpu.memory_space<vmem>>, vector<16x16xf32>
    %cst_21 = arith.constant dense<0.000000e+00> : vector<2x16xf32>
    %61 = tpu.matmul %59, %60, %cst_21 {dimension_numbers = #tpu.dot_dimension_numbers<[1], [0], [0], [1], [0, 0, 1, 1], [], []>} : vector<2x16xf32>, vector<16x16xf32>, vector<2x16xf32> -> vector<2x16xf32>
    %c72 = arith.constant 72 : index
    %c0_22 = arith.constant 0 : index
    %62 = vector.load %arg3[%c72, %c0_22] : memref<104x48xf32, #tpu.memory_space<vmem>>, vector<1x16xf32>
    %63 = vector.broadcast %62 : vector<1x16xf32> to vector<2x16xf32>
    %64 = arith.addf %61, %63 : vector<2x16xf32>
    %cst_23 = arith.constant 0.000000e+00 : f32
    %65 = vector.broadcast %cst_23 : f32 to vector<2x16xf32>
    %66 = arith.maximumf %64, %65 : vector<2x16xf32>
    %c80 = arith.constant 80 : index
    %c0_24 = arith.constant 0 : index
    %67 = vector.load %arg3[%c80, %c0_24] : memref<104x48xf32, #tpu.memory_space<vmem>>, vector<16x2xf32>
    %cst_25 = arith.constant dense<0.000000e+00> : vector<2x2xf32>
    %68 = tpu.matmul %66, %67, %cst_25 {dimension_numbers = #tpu.dot_dimension_numbers<[1], [0], [0], [1], [0, 0, 1, 1], [], []>} : vector<2x16xf32>, vector<16x2xf32>, vector<2x2xf32> -> vector<2x2xf32>
    %c96 = arith.constant 96 : index
    %c0_26 = arith.constant 0 : index
    %69 = vector.load %arg3[%c96, %c0_26] : memref<104x48xf32, #tpu.memory_space<vmem>>, vector<1x2xf32>
    %70 = vector.broadcast %69 : vector<1x2xf32> to vector<2x2xf32>
    %71 = arith.addf %68, %70 : vector<2x2xf32>
    %cst_27 = arith.constant dense<0xFF800000> : vector<2xf32>
    %72 = vector.multi_reduction <maximumf>, %71, %cst_27 [1] : vector<2x2xf32> to vector<2xf32>
    %73 = vector.shape_cast %72 : vector<2xf32> to vector<2x1xf32>
    %74 = vector.broadcast %73 : vector<2x1xf32> to vector<2x2xf32>
    %75 = arith.subf %71, %74 : vector<2x2xf32>
    %76 = math.exp %75 : vector<2x2xf32>
    %cst_28 = arith.constant dense<0.000000e+00> : vector<2xf32>
    %77 = vector.multi_reduction <add>, %76, %cst_28 [1] : vector<2x2xf32> to vector<2xf32>
    %78 = vector.shape_cast %77 : vector<2xf32> to vector<2x1xf32>
    %79 = math.log %78 : vector<2x1xf32>
    %80 = vector.broadcast %73 : vector<2x1xf32> to vector<2x2xf32>
    %81 = arith.subf %71, %80 : vector<2x2xf32>
    %82 = vector.broadcast %79 : vector<2x1xf32> to vector<2x2xf32>
    %83 = arith.subf %81, %82 : vector<2x2xf32>
    %c0_29 = arith.constant 0 : index
    %c0_30 = arith.constant 0 : index
    %84 = vector.load %arg4[%c0_29, %c0_30] : memref<2x2xf32, #tpu.memory_space<vmem>>, vector<2x2xf32>
    tpu.vector_store %arg4[%c0_29, %c0_30], %83 {strides = array<i32>} : memref<2x2xf32, #tpu.memory_space<vmem>>, vector<2x2xf32>,
    return
  }
  func.func @transform_0(%arg0: i32) -> (i32, i32) {
    %c0_i32 = arith.constant 0 : i32
    %c0_i32_0 = arith.constant 0 : i32
    return %arg0, %c0_i32 : i32, i32
  }
  func.func @transform_1(%arg0: i32) -> (i32, i32) {
    %c0_i32 = arith.constant 0 : i32
    %c0_i32_0 = arith.constant 0 : i32
    %c0_i32_1 = arith.constant 0 : i32
    return %c0_i32, %c0_i32_0 : i32, i32
  }
  func.func @transform_2(%arg0: i32) -> (i32, i32) {
    %c0_i32 = arith.constant 0 : i32
    %c0_i32_0 = arith.constant 0 : i32
    %c0_i32_1 = arith.constant 0 : i32
    return %c0_i32, %c0_i32_0 : i32, i32
  }
  func.func @transform_3(%arg0: i32) -> (i32, i32) {
    %c0_i32 = arith.constant 0 : i32
    %c0_i32_0 = arith.constant 0 : i32
    return %arg0, %c0_i32 : i32, i32
  }
}

</mosaic_0001>

<bundles_post_ra>
// kernel: tpu_custom_call.1
= control target key start
LH: loop header
LB: loop body
LE: loop exit
PB: predicated region body
PF: predicated region fallthrough
CT: control target
= control target key end

     0   :  { %8 = vsyncpa [#allocation3], 0  ;;  %s952_s0 = inlined_call_operand.vmem [shape: f32[2,32], index: 0, kind: input, shape index: {}]   ;;  %s953_s1 = inlined_call_operand.hbm [shape: f32[160,256], index: 1, kind: input, shape index: {}]   ;;  %s954_s2 = inlined_call_operand.vmem [shape: f32[104,48], index: 2, kind: input, shape index: {}]   ;;  %s955_s3 = inlined_call_operand.hbm [shape: f32[2,2], index: 3, kind: output, shape index: {}]  }
   0x1   :  { %9 = vsyncpa [#allocation4], 0  ;;  %s829_s12 = smov [#allocation2]   ;;  %s781_s16 = scalar_lea.hbm %s953_s1, 5120 }
   0x2   :  { %s17_s13 = sshll.u32 %s829_s12, 4  ;;  %p782_p0 = scmp.ne.s32.totalorder %s953_s1, %s781_s16  ;;  %s18_s13 = int_to_ptr.vmem [resolvable:$true] %s17_s13 }
   0x3   :  { %p785_p1 = scmp.lt.u32.totalorder %s781_s16, %s953_s1 }
   0x5   :  { %p787_p2 = pnand %p785_p1, %p782_p0 }
   0x7   :  { %790 = shalt.err (!%p787_p2)
}
   0x8   :  { %s791_s21 = scalar_lea.vmem %s18_s13, 5120  ;;  %p796_p4 = scmp.lt.s32.totalorder %s18_s13, %s18_s13 }
   0x9   :  { %p792_p3 = scmp.ne.s32.totalorder %s18_s13, %s791_s21  ;;  %p797_p5 = scmp.lt.s32.totalorder %s791_s21, %s791_s21 }
   0xb   :  { %p798_p6 = por %p797_p5, %p796_p4 }
   0xd   :  { %p799_p7 = pnand %p798_p6, %p792_p3 }
   0xf   :  { %802 = shalt.err (!%p799_p7)
}
  0x10   :  { %s830_s22 = smov 256   ;;  %s831_s23 = smov 16  }
  0x11   :  { %23 = dma.hbm_to_vmem [thread:$0]  %s953_s1, 5120, %s18_s13, [#allocation3], %s830_s22, %s830_s22, %s831_s23  }
  0x12   :  { %825 = dma.done.wait [#allocation3], 5120  }
  0x13   :  { %826 = vsyncadd [#allocation3], 4294962176  ;;  %v832_v0 = vmov 0.0   ;;  %v31_v1 = vld [vmem:[#allocation2 + $0x8] sm:$0xff]  ;;  %v33_v2 = vld [vmem:[#allocation2 + $0x18] sm:$0xff]  ;;  %vm51_vm0 = vcmask 261120   ;;  %v41_v56 = vlaneseq }
  0x14   :  { %119 = vmatprep.mubr.f32.mxu0 %v832_v0  ;;  %240 = vmatprep.mubr.f32.mxu1 %v832_v0  ;;  %v30_v3 = vld [vmem:[#allocation2] sm:$0xff]  ;;  %v702_v4 = vpack.c.bf16 %v33_v2, %v31_v1  ;;  %v32_v5 = vld [vmem:[#allocation2 + $0x10] sm:$0xff]  ;;  %v35_v6 = vld [vmem:[#allocation2 + $0x28] sm:$0xff]  ;;  %vm172_vm1 = vcmask 916480   ;;  %vm261_vm2 = vcmask 1041408   ;;  %vm834_vm3 = vmmov 0  }
  0x15   :  { %v37_v7 = vld [vmem:[#allocation2 + $0x38] sm:$0xff]  ;;  %v704_v8 = vpack.c.bf16 %v32_v5, %v30_v3  ;;  %v34_v10 = vld [vmem:[#allocation2 + $0x20] sm:$0xff]  ;;  %v36_v11 = vld [vmem:[#allocation2 + $0x30] sm:$0xff]  ;;  %v42_v57 = vshrl.u32 %v41_v56, 7  ;;  %vm257_vm4 = vcmask 146432   ;;  %s835_s7 = smov 96  }
  0x16   :  { %v706_v9 = vpack.c.bf16 %v37_v7, %v35_v6  ;;  %703 = vmatprep.subr.bf16.mxu0 %v702_v4  ;;  %v132_v12 = vld [vmem:[#allocation2 + $0x58] sm:$0xff]  ;;  %v134_v13 = vld [vmem:[#allocation2 + $0x68] sm:$0xff]  ;;  %v131_v14 = vld [vmem:[#allocation2 + $0x50] sm:$0xff]  ;;  %v708_v15 = vpack.c.bf16 %v36_v11, %v34_v10  ;;  %s836_s12 = smov 112   ;;  %vm363_vm5 = vcmask 130048   ;;  %vm617_vm6 = vcmask 9216  }
  0x17   :  { %705 = vmatpush1.bf16.msra.mxu0 %v704_v8  ;;  %v710_v16 = vpack.c.bf16 %v134_v13, %v132_v12  ;;  %v133_v17 = vld [vmem:[#allocation2 + $0x60] sm:$0xff]  ;;  %v136_v18 = vld [vmem:[#allocation2 + $0x78] sm:$0xff]  ;;  %v138_v19 = vld [vmem:[#allocation2 + $0x88] sm:$0xff]  ;;  %v43_v58 = vsub.s32 0, %v42_v57  ;;  %v47_v60 = vsub.s32 1, %v42_v57  ;;  %v833_v12 = vmov 0.0|0.0  }
  0x18   :  { %707 = vmatprep.subr.bf16.mxu0 %v706_v9  ;;  %v712_v20 = vpack.c.bf16 %v133_v17, %v131_v14  ;;  %v714_v21 = vpack.c.bf16 %v138_v19, %v136_v18  ;;  %v29_v22 = vld [vmem:[%s952_s0] sm:$0x3]  ;;  %v135_v23 = vld [vmem:[#allocation2 + $0x70] sm:$0xff]  ;;  %v140_v26 = vld [vmem:[#allocation2 + $0x98] sm:$0xff]  ;;  %s837_s26 = smov [#allocation5]  }
  0x19   :  { %711 = vmatprep.subr.bf16.mxu1 %v710_v16  ;;  %v137_v24 = vld [vmem:[#allocation2 + $0x80] sm:$0xff]  ;;  %v142_v27 = vld [vmem:[#allocation2 + $0xa8] sm:$0xff]  ;;  %v139_v29 = vld [vmem:[#allocation2 + $0x90] sm:$0xff] }
  0x1a   :  { %713 = vmatpush1.bf16.msra.mxu1 %v712_v20  ;;  %v716_v25 = vpack.c.bf16 %v137_v24, %v135_v23  ;;  %v718_v28 = vpack.c.bf16 %v142_v27, %v140_v26  ;;  %v141_v30 = vld [vmem:[#allocation2 + $0xa0] sm:$0xff]  ;;  %v144_v32 = vld [vmem:[#allocation2 + $0xb8] sm:$0xff]  ;;  %v146_v33 = vld [vmem:[#allocation2 + $0xc8] sm:$0xff] }
  0x1b   :  { %709 = vmatpush1.bf16.msra.mxu0 %v708_v15  ;;  %715 = vmatprep.subr.bf16.mxu1 %v714_v21  ;;  %v720_v31 = vpack.c.bf16 %v141_v30, %v139_v29  ;;  %v722_v34 = vpack.c.bf16 %v146_v33, %v144_v32  ;;  %v143_v35 = vld [vmem:[#allocation2 + $0xb0] sm:$0xff]  ;;  %v145_v36 = vld [vmem:[#allocation2 + $0xc0] sm:$0xff]  ;;  %v148_v38 = vld [vmem:[#allocation2 + $0xd8] sm:$0xff] }
  0x1c   :  { %v724_v37 = vpack.c.bf16 %v145_v36, %v143_v35  ;;  %v150_v39 = vld [vmem:[#allocation2 + $0xe8] sm:$0xff]  ;;  %v147_v41 = vld [vmem:[#allocation2 + $0xd0] sm:$0xff]  ;;  %v149_v42 = vld [vmem:[#allocation2 + $0xe0] sm:$0xff]  ;;  %738 = vmatprep.subr.bf16.mxu0 %v833_v12 }
  0x1d   :  { %v726_v40 = vpack.c.bf16 %v150_v39, %v148_v38  ;;  %v728_v43 = vpack.c.bf16 %v149_v42, %v147_v41  ;;  %v152_v44 = vld [vmem:[#allocation2 + $0xf8] sm:$0xff]  ;;  %v154_v45 = vld [vmem:[#allocation2 + $0x108] sm:$0xff]  ;;  %v151_v47 = vld [vmem:[#allocation2 + $0xf0] sm:$0xff] }
  0x1e   :  { %646 = vmatmul.mubr.msk.f32.vlgmr.msra.gmra.mrb[0].mxu0 %vm51_vm0, %v29_v22  ;;  %717 = vmatpush1.bf16.msra.mxu1 %v716_v25  ;;  %v730_v46 = vpack.c.bf16 %v154_v45, %v152_v44  ;;  %v153_v48 = vld [vmem:[#allocation2 + $0x100] sm:$0xff]  ;;  %v156_v50 = vld [vmem:[#allocation2 + $0x118] sm:$0xff]  ;;  %v158_v51 = vld [vmem:[#allocation2 + $0x128] sm:$0xff] }
  0x1f   :  { %719 = vmatprep.subr.bf16.mxu1 %v718_v28  ;;  %v732_v49 = vpack.c.bf16 %v153_v48, %v151_v47  ;;  %v734_v52 = vpack.c.bf16 %v158_v51, %v156_v50  ;;  %v155_v53 = vld [vmem:[#allocation2 + $0x110] sm:$0xff]  ;;  %v157_v54 = vld [vmem:[#allocation2 + $0x120] sm:$0xff]  ;;  %v250_v10 = vld [vmem:[%s954_s2 + $0x8] sm:$0xff]  ;;  %678 = vmatprep.mubr.msk.f32.mxu0 %vm834_vm3, %v832_v0 }
  0x20   :  { %v736_v55 = vpack.c.bf16 %v157_v54, %v155_v53  ;;  %v39_v59 = vld [vmem:[#allocation2 + $0x40] ss:$8 sm:$0x3]  ;;  %v251_v13 = vld [vmem:[%s954_s2 + $0x10] sm:$0x3] }
  0x21   :  { %v44_v61 = vrot.slane %v39_v59, %v43_v58  ;;  %v48_v62 = vrot.slane %v39_v59, %v47_v60  ;;  %v249_v9 = vld [vmem:[%s954_s2] sm:$0xff]  ;;  %v160_v14 = vld [vmem:[#allocation2 + $0x130] ss:$8 sm:$0x3]  ;;  %v354_v35 = vld [vmem:[%s954_s2 + $0x28] sm:$0xff] }
  0x22   :  { %721 = vmatpush1.bf16.msra.mxu1 %v720_v31  ;;  %v739_v11 = vpack.c.bf16 %v250_v10, %v249_v9  ;;  %v165_v15 = vrot.slane %v160_v14, %v43_v58  ;;  %v169_v16 = vrot.slane %v160_v14, %v47_v60  ;;  %v648_v23 = vld [vmem:[%s954_s2 + $0x18] ss:$0 sm:$0xff]  ;;  %v652_v41 = vld [vmem:[%s954_s2 + $0x30] ss:$0 sm:$0xff]  ;;  %v455_v53 = vld [vmem:[%s954_s2 + $0x40] sm:$0xff] }
  0x23   :  { %723 = vmatprep.subr.bf16.mxu1 %v722_v34  ;;  %v353_v34 = vld [vmem:[%s954_s2 + $0x20] sm:$0xff]  ;;  %v537_v59 = vld [vmem:[%s954_s2 + $0x50] sm:$0xff]  ;;  %v538_v60 = vld [vmem:[%s954_s2 + $0x58] sm:$0xff] }
  0x24   :  { %740 = vmatpush3.bf16.msra.mxu0 %v739_v11  ;;  %v742_v36 = vpack.c.bf16 %v354_v35, %v353_v34 }
  0x25   :  { %676 = vmatprep.subr.mxu0 %v832_v0 }
  0x26   :  { %725 = vmatpush1.bf16.msra.mxu1 %v724_v37 }
  0x27   :  { %727 = vmatprep.subr.bf16.mxu1 %v726_v40 }
  0x28   :  { %677 = vmatpush3.msk.msra.mxu0 %vm261_vm2, %v251_v13 }
  0x29   :  { %741 = vmatprep.subr.bf16.mxu0 %v833_v12 }
  0x2a   :  { %729 = vmatpush1.bf16.msra.mxu1 %v728_v43 }
  0x2b   :  { %731 = vmatprep.subr.bf16.mxu1 %v730_v46 }
  0x2e   :  { %733 = vmatpush1.bf16.msra.mxu1 %v732_v49 }
  0x2f   :  { %735 = vmatprep.subr.bf16.mxu1 %v734_v52  ;;  %v454_v52 = vld [vmem:[%s954_s2 + $0x38] sm:$0xff] }
  0x30   :  { %v745_v54 = vpack.c.bf16 %v455_v53, %v454_v52 }
  0x32   :  { %737 = vmatpush1.bf16.msra.mxu1 %v736_v55 }
  0xf1   :  { %v121_v63 = vpop.f32.mrb[0].mxu0 }
  0xf2   :  { %v122_v1 = vadd.f32 %v121_v63, %v44_v61  ;;  %v123_v2 = vpop.f32.mrb[1].mxu0  ;;  %v748_v61 = vpack.c.bf16 %v538_v60, %v537_v59 }
  0xf3   :  { %v124_v3 = vadd.f32 %v123_v2, %v48_v62  ;;  %v655_v62 = vld [vmem:[%s954_s2 + $0x48] ss:$0 sm:$0xff] }
  0xf5   :  { %v126_v4 = vmax.f32 %v122_v1, %v124_v3 }
  0xf7   :  { %v127_v5 = vmax.f32 %v126_v4, 0.0 }
  0xf9   :  { %v128_v6 = vadd.f32 0.01, %v127_v5 }
  0xfb   :  { %759 = vlog2.f32 %v128_v6 }
 0x105   :  { %v760_v7 = vpop.eup %759 }
 0x106   :  { %v130_v8 = vmul.f32 0.6931472, %v760_v7 }
 0x108   :  { %647 = vmatmul.mubr.msk.f32.vlgmr.msra.gmra.mrb[0].mxu1 %vm172_vm1, %v130_v8 }
 0x1db   :  { %v242_v17 = vpop.f32.mrb[0].mxu1 }
 0x1dc   :  { %v243_v18 = vadd.f32 %v242_v17, %v165_v15  ;;  %v244_v19 = vpop.f32.mrb[1].mxu1 }
 0x1dd   :  { %v245_v20 = vadd.f32 %v244_v19, %v169_v16 }
 0x1df   :  { %v247_v21 = vmax.f32 %v243_v18, %v245_v20 }
 0x1e1   :  { %v248_v22 = vmax.f32 %v247_v21, 0.0 }
 0x1e3   :  { %679 = vmatmul.mubr.msk.f32.vlgmr.msra.gmra.mrb[2].mxu0 %vm257_vm4, %v248_v22 }
 0x1e4   :  { %685 = vmatprep.mubr.msk.f32.mxu0 %vm834_vm3, %v832_v0  ;;  %743 = vmatpush3.bf16.msra.mxu0 %v742_v36 }
 0x1e5   :  { %744 = vmatprep.subr.bf16.mxu0 %v833_v12 }
 0x2b6   :  { %v331_v24 = vpop.f32.mrb[2].mxu0 }
 0x2b7   :  { %v332_v25 = vadd.f32 %v648_v23, %v331_v24  ;;  %v680_v26 = vpop.f32.mrb[3].mxu0 }
 0x2b9   :  { %761 = vtanh.f32 %v332_v25  ;;  %v651_v28 = vmul.f32 -1.442695, %v332_v25 }
 0x2bb   :  { %763 = vpow2.f32 %v651_v28 }
 0x2c3   :  { %v762_v27 = vpop.eup %761 }
 0x2c4   :  { %343 = vrot.lane.b32.xlu0 %v762_v27, %s835_s7 }
 0x2c5   :  { %v764_v29 = vpop.eup %763 }
 0x2c6   :  { %v338_v30 = vadd.f32 1.0, %v764_v29 }
 0x2c8   :  { %765 = vrcp.f32 %v338_v30 }
 0x2d2   :  { %v766_v31 = vpop.eup %765 }
 0x336   :  { %v344_v32 = vpop.permute.xlu0 %343 }
 0x337   :  { %v346_v33 = vmul.f32 %v766_v31, %v344_v32 }
 0x339   :  { %767 = vtanh.f32 %v346_v33 }
 0x343   :  { %v768_v37 = vpop.eup %767 }
 0x344   :  { %349 = vrot.lane.b32.xlu0 %v768_v37, %s831_s23 }
 0x3b6   :  { %v350_v38 = vpop.permute.xlu0 %349 }
 0x3b7   :  { %v352_v39 = vmul.f32 %v766_v31, %v350_v38 }
 0x3b9   :  { %361 = vrot.lane.b32.xlu1 %v352_v39, %s836_s12 }
 0x42b   :  { %v362_v40 = vpop.permute.xlu1 %361 }
 0x42c   :  { %686 = vmatmul.mubr.msk.f32.vlgmr.msra.gmra.mrb[4].mxu0 %vm363_vm5, %v362_v40 }
 0x42d   :  { %692 = vmatprep.mubr.msk.f32.mxu0 %vm834_vm3, %v832_v0  ;;  %746 = vmatpush3.bf16.msra.mxu0 %v745_v54 }
 0x42e   :  { %747 = vmatprep.subr.bf16.mxu0 %v833_v12 }
 0x4ff   :  { %v432_v42 = vpop.f32.mrb[4].mxu0 }
 0x500   :  { %v433_v43 = vadd.f32 %v652_v41, %v432_v42  ;;  %v687_v44 = vpop.f32.mrb[5].mxu0 }
 0x502   :  { %769 = vtanh.f32 %v433_v43  ;;  %v654_v46 = vmul.f32 -1.442695, %v433_v43 }
 0x504   :  { %771 = vpow2.f32 %v654_v46 }
 0x50c   :  { %v770_v45 = vpop.eup %769 }
 0x50d   :  { %444 = vrot.lane.b32.xlu1 %v770_v45, %s835_s7 }
 0x50e   :  { %v772_v47 = vpop.eup %771 }
 0x50f   :  { %v439_v48 = vadd.f32 1.0, %v772_v47 }
 0x511   :  { %773 = vrcp.f32 %v439_v48 }
 0x51b   :  { %v774_v49 = vpop.eup %773 }
 0x57f   :  { %v445_v50 = vpop.permute.xlu1 %444 }
 0x580   :  { %v447_v51 = vmul.f32 %v774_v49, %v445_v50 }
 0x582   :  { %775 = vtanh.f32 %v447_v51 }
 0x58c   :  { %v776_v55 = vpop.eup %775 }
 0x58d   :  { %450 = vrot.lane.b32.xlu0 %v776_v55, %s831_s23 }
 0x5ff   :  { %v451_v56 = vpop.permute.xlu0 %450 }
 0x600   :  { %v453_v57 = vmul.f32 %v774_v49, %v451_v56 }
 0x602   :  { %462 = vrot.lane.b32.xlu1 %v453_v57, %s836_s12 }
 0x674   :  { %v463_v58 = vpop.permute.xlu1 %462 }
 0x675   :  { %693 = vmatmul.mubr.msk.f32.vlgmr.msra.gmra.mrb[6].mxu0 %vm363_vm5, %v463_v58 }
 0x676   :  { %699 = vmatprep.mubr.msk.f32.mxu0 %vm834_vm3, %v832_v0  ;;  %749 = vmatpush3.bf16.msra.mxu0 %v748_v61  ;;  %v657_v0 = vld [vmem:[%s954_s2 + $0x60] ss:$0 sm:$0xff]  ;;  %s637_s2 = sshll.u32 %s837_s26, 4  ;;  %s638_s2 = int_to_ptr.vmem [resolvable:$true] %s637_s2 }
 0x677   :  { %s803_s0 = scalar_lea.vmem %s638_s2, 32  ;;  %p808_p9 = scmp.lt.s32.totalorder %s638_s2, %s638_s2 }
 0x678   :  { %p804_p8 = scmp.ne.s32.totalorder %s638_s2, %s803_s0  ;;  %p809_p10 = scmp.lt.s32.totalorder %s803_s0, %s803_s0 }
 0x67a   :  { %p810_p11 = por %p809_p10, %p808_p9 }
 0x67c   :  { %p811_p12 = pnand %p810_p11, %p804_p8 }
 0x748   :  { %v532_v63 = vpop.f32.mrb[6].mxu0 }
 0x749   :  { %v533_v1 = vadd.f32 %v655_v62, %v532_v63  ;;  %v694_v2 = vpop.f32.mrb[7].mxu0 }
 0x74b   :  { %v536_v3 = vmax.f32 %v533_v1, 0.0 }
 0x74d   :  { %700 = vmatmul.mubr.msk.f32.vlgmr.msra.gmra.mrb[8].mxu0 %vm363_vm5, %v536_v3 }
 0x820   :  { %v613_v4 = vpop.f32.mrb[8].mxu0 }
 0x821   :  { %v614_v5 = vadd.f32 %v657_v0, %v613_v4  ;;  %v701_v6 = vpop.f32.mrb[9].mxu0 }
 0x823   :  { %v618_v7 = vsel %vm617_vm6, %v614_v5, -inf }
 0x824   :  { %619 = vmax.xlane.f32.xlu0 %v618_v7 }
 0x8b1   :  { %v620_v8 = vpop.xlane.xlu0 %619 }
 0x8b2   :  { %v621_v9 = vsub.f32 %v614_v5, %v620_v8 }
 0x8b4   :  { %v622_v10 = vmul.f32 1.442695, %v621_v9 }
 0x8b6   :  { %777 = vpow2.f32 %v622_v10 }
 0x8c0   :  { %v778_v11 = vpop.eup %777 }
 0x8c1   :  { %v624_v12 = vsel %vm617_vm6, %v778_v11, 0.0 }
 0x8c2   :  { %625 = vadd.xlane.f32.xlu1 %v624_v12 }
 0x94f   :  { %v626_v13 = vpop.xlane.xlu1 %625 }
 0x950   :  { %779 = vlog2.f32 %v626_v13 }
 0x95a   :  { %v780_v14 = vpop.eup %779 }
 0x95b   :  { %v628_v15 = vmul.f32 0.6931472, %v780_v14 }
 0x95d   :  { %v629_v16 = vsub.f32 %v621_v9, %v628_v15 }
 0x95f   :  { %630 = vst.msk [vmem:[#allocation5] sm:$0x3] %vm617_vm6, %v629_v16 }
 0x960   :  { %814 = shalt.err (!%p811_p12)
}
 0x961   :  { %s815_s29 = scalar_lea.hbm %s955_s3, 32 }
 0x962   :  { %p816_p13 = scmp.ne.s32.totalorder %s955_s3, %s815_s29  ;;  %p819_p0 = scmp.lt.u32.totalorder %s815_s29, %s955_s3 }
 0x964   :  { %p821_p1 = pnand %p819_p0, %p816_p13 }
 0x966   :  { %824 = shalt.err (!%p821_p1)
}
 0x967   :  { %640 = dma.vmem_to_hbm [thread:$0]  %s638_s2, 32, %s955_s3, [#allocation4]  }
 0x968   :  { %827 = dma.done.wait [#allocation4], 32  }
 0x969   :  { %828 = vsyncadd [#allocation4], 4294967264 }
 0x96a   :  { %644 = vsyncpa [#allocation3], 1 }
 0x96b   :  { %645 = vsyncpa [#allocation4], 1 }

</bundles_post_ra>
